<compile_context>
chip_gen: v6e
topology: v6e:2x2x1
jax: 0.10.0
libtpu: 0.0.40
codegen_flags: <defaults>
</compile_context>

<pallas_src>
import jax
import jax.numpy as jnp
from jax.experimental import pallas as pl
from jax.experimental.pallas import tpu as pltpu


def gesture_mlp_kernel(x_ref, w1_ref, b1_ref, w2_ref, b2_ref, w3_ref, b3_ref,
                       o_ref):
    """Fused 3-layer MLP on one (TB, Fp) batch tile."""
    x = x_ref[...]

    # Layer 1: Linear(64 -> 128) + ReLU   (f32 accumulation on the MXU)
    h1 = jnp.dot(x, w1_ref[...], preferred_element_type=jnp.float32)
    h1 = jnp.maximum(h1 + b1_ref[...], 0.0)

    # Layer 2: Linear(128 -> 64) + ReLU
    h2 = jnp.dot(h1.astype(w2_ref.dtype), w2_ref[...],
                 preferred_element_type=jnp.float32)
    h2 = jnp.maximum(h2 + b2_ref[...], 0.0)

    # Layer 3: Linear(64 -> 5), logits. Narrow lane-5 store kept on purpose:
    # output is 20 B/row vs 256 B/row of input, far from the store-slot limit.
    logits = jnp.dot(h2.astype(w3_ref.dtype), w3_ref[...],
                     preferred_element_type=jnp.float32)
    o_ref[...] = (logits + b3_ref[...]).astype(o_ref.dtype)


def _round_up(a, m):
    return (a + m - 1) // m * m


def gesture_classifier_forward(x, params, *, max_tb=4096,
                               compute_dtype=jnp.bfloat16):
    """x: (B, input_size) f32. params: dict of (in, out)-layout weights/biases."""
    w1, b1, w2, b2, w3, b3 = (params["w1"], params["b1"], params["w2"],
                              params["b2"], params["w3"], params["b3"])
    B, F = x.shape
    H1 = w1.shape[1]
    H2 = w2.shape[1]
    C = w3.shape[1]

    # Feature-dim pad 63 -> 64 (multiple of 16 => clean for f32 and bf16
    # packing). The x pad is fused by XLA with the dtype cast -> single pass.
    Fp = _round_up(F, 16)
    x_c = x
    w1_c = w1
    if Fp != F:
        x_c = jnp.pad(x_c, ((0, 0), (0, Fp - F)))
        w1_c = jnp.pad(w1_c, ((0, Fp - F), (0, 0)))
    x_c = x_c.astype(compute_dtype)
    w1_c = w1_c.astype(compute_dtype)
    w2_c = w2.astype(compute_dtype)
    w3_c = w3.astype(compute_dtype)

    # Batch tile: multiple of 8 (sublane), capped at max_tb, and capped at
    # ~half the batch so the grid has >=2 steps (both v7x TCs get work).
    TB = min(max_tb, max(8, _round_up(pl.cdiv(B, 2), 8)))
    grid = (pl.cdiv(B, TB),)   # partial last block handled by Pallas masking

    resident = lambda i: (0, 0)  # constant block index -> DMA'd once, VMEM-resident

    weight_bytes = ((Fp * H1 + H1 * H2 + H2 * C) *
                    jnp.dtype(compute_dtype).itemsize + (H1 + H2 + C) * 4)
    cost = pl.CostEstimate(
        flops=2 * B * (Fp * H1 + H1 * H2 + H2 * C),
        transcendentals=0,
        bytes_accessed=B * Fp * jnp.dtype(compute_dtype).itemsize
                       + B * C * 4 + weight_bytes,
    )

    out = pl.pallas_call(
        gesture_mlp_kernel,
        out_shape=jax.ShapeDtypeStruct((B, C), jnp.float32),
        grid=grid,
        in_specs=[
            pl.BlockSpec((TB, Fp), lambda i: (i, 0)),  # x tile, pipelined
            pl.BlockSpec((Fp, H1), resident),          # w1
            pl.BlockSpec((1, H1), resident),           # b1 (f32)
            pl.BlockSpec((H1, H2), resident),          # w2
            pl.BlockSpec((1, H2), resident),           # b2 (f32)
            pl.BlockSpec((H2, C), resident),           # w3
            pl.BlockSpec((1, C), resident),            # b3 (f32)
        ],
        out_specs=pl.BlockSpec((TB, C), lambda i: (i, 0)),
        compiler_params=pltpu.CompilerParams(
            dimension_semantics=("parallel",),          # megacore on v7x
            vmem_limit_bytes=32 * 1024 * 1024,          # headroom on v7x's 64 MiB
        ),
        cost_estimate=cost,
    )(x_c, w1_c, b1, w2_c, b2, w3_c, b3)

    return out


def init_params(key, input_size=63, hidden_size=128, num_classes=5):
    """Deterministic synthetic init (shapes match the PyTorch module)."""
    k1, k2, k3 = jax.random.split(key, 3)
    w1 = jax.random.normal(k1, (input_size, hidden_size), jnp.float32) * (1.0 / jnp.sqrt(input_size))
    b1 = jnp.zeros((1, hidden_size), jnp.float32)
    w2 = jax.random.normal(k2, (hidden_size, 64), jnp.float32) * (1.0 / jnp.sqrt(hidden_size))
    b2 = jnp.zeros((1, 64), jnp.float32)
    w3 = jax.random.normal(k3, (64, num_classes), jnp.float32) * (1.0 / jnp.sqrt(64.0))
    b3 = jnp.zeros((1, num_classes), jnp.float32)
    return {"w1": w1, "b1": b1, "w2": w2, "b2": b2, "w3": w3, "b3": b3}


def reference_forward(x, p):
    """Pure-JAX f32 reference (PyTorch semantics)."""
    h1 = jnp.maximum(x @ p["w1"] + p["b1"], 0.0)
    h2 = jnp.maximum(h1 @ p["w2"] + p["b2"], 0.0)
    return h2 @ p["w3"] + p["b3"]


def reference_forward_lowp(x, p, dtype):
    """Reference matching the kernel's low-precision inputs + f32 accumulation."""
    up = lambda a: a.astype(dtype).astype(jnp.float32)
    h1 = jnp.maximum(up(x) @ up(p["w1"]) + p["b1"], 0.0)
    h2 = jnp.maximum(up(h1) @ up(p["w2"]) + p["b2"], 0.0)
    return up(h2) @ up(p["w3"]) + p["b3"]


if __name__ == "__main__":
    key = jax.random.PRNGKey(0)
    kx, kx2, kp = jax.random.split(key, 3)

    input_size, hidden_size, num_classes = 63, 128, 5
    params = init_params(kp, input_size, hidden_size, num_classes)

    # --- Small batch, f32 compute path: bit-tight vs the PyTorch-semantics ref.
    x_small = jax.random.normal(kx, (8, input_size), jnp.float32)
    out_f32 = jax.block_until_ready(
        gesture_classifier_forward(x_small, params, compute_dtype=jnp.float32))
    ref_f32 = reference_forward(x_small, params)
    assert out_f32.shape == (8, num_classes), out_f32.shape
    assert jnp.allclose(out_f32, ref_f32, atol=1e-4, rtol=1e-4), "f32 small-batch mismatch"

    # --- Small batch, default bf16 compute path (f32 accumulation).
    out_bf = jax.block_until_ready(gesture_classifier_forward(x_small, params))
    ref_bf = reference_forward_lowp(x_small, params, jnp.bfloat16)
    assert jnp.allclose(out_bf, ref_bf, atol=2e-2, rtol=2e-2), "bf16 small-batch mismatch"
    assert jnp.allclose(out_bf, ref_f32, atol=0.2, rtol=0.2), "bf16 vs f32 drifted too far"

    # --- Larger, non-divisible batch: multi-step grid + partial last block
    #     (no wrapper-side batch pad), f32 and bf16 paths.
    x_big = jax.random.normal(kx2, (300, input_size), jnp.float32)
    out_big = jax.block_until_ready(
        gesture_classifier_forward(x_big, params, compute_dtype=jnp.float32))
    ref_big = reference_forward(x_big, params)
    assert out_big.shape == (300, num_classes), out_big.shape
    assert jnp.allclose(out_big, ref_big, atol=1e-4, rtol=1e-4), "f32 grid-batch mismatch"

    out_big_bf = jax.block_until_ready(gesture_classifier_forward(x_big, params))
    ref_big_bf = reference_forward_lowp(x_big, params, jnp.bfloat16)
    assert jnp.allclose(out_big_bf, ref_big_bf, atol=2e-2, rtol=2e-2), "bf16 grid-batch mismatch"

    print("KERNEL_OK")
</pallas_src>

<mosaic_0001>
module attributes {stable_mosaic.version = 11 : i64} {
  func.func @gesture_mlp_kernel(%arg0: i32, %arg1: memref<8x64xf32, #tpu.memory_space<vmem>>, %arg2: memref<64x128xf32, #tpu.memory_space<vmem>>, %arg3: memref<1x128xf32, #tpu.memory_space<vmem>>, %arg4: memref<128x64xf32, #tpu.memory_space<vmem>>, %arg5: memref<1x64xf32, #tpu.memory_space<vmem>>, %arg6: memref<64x5xf32, #tpu.memory_space<vmem>>, %arg7: memref<1x5xf32, #tpu.memory_space<vmem>>, %arg8: memref<8x5xf32, #tpu.memory_space<vmem>>) attributes {dimension_semantics = [#tpu.dimension_semantics<parallel>], iteration_bounds = array<i64: 1>, scalar_prefetch = 0 : i64, scratch_operands = 0 : i64, tpu.core_type = #tpu.core_type<tc>, window_params = [{transform_indices = @transform_0, window_bounds = array<i64: 8, 64>}, {pipeline_mode = #tpu.pipeline_mode<synchronous>, transform_indices = @transform_1, window_bounds = array<i64: 64, 128>}, {pipeline_mode = #tpu.pipeline_mode<synchronous>, transform_indices = @transform_2, window_bounds = array<i64: 1, 128>}, {pipeline_mode = #tpu.pipeline_mode<synchronous>, transform_indices = @transform_3, window_bounds = array<i64: 128, 64>}, {pipeline_mode = #tpu.pipeline_mode<synchronous>, transform_indices = @transform_4, window_bounds = array<i64: 1, 64>}, {pipeline_mode = #tpu.pipeline_mode<synchronous>, transform_indices = @transform_5, window_bounds = array<i64: 64, 5>}, {pipeline_mode = #tpu.pipeline_mode<synchronous>, transform_indices = @transform_6, window_bounds = array<i64: 1, 5>}, {transform_indices = @transform_7, window_bounds = array<i64: 8, 5>}]} {
    %c0 = arith.constant 0 : index
    %c0_0 = arith.constant 0 : index
    %0 = vector.load %arg1[%c0, %c0_0] : memref<8x64xf32, #tpu.memory_space<vmem>>, vector<8x64xf32>
    %c0_1 = arith.constant 0 : index
    %c0_2 = arith.constant 0 : index
    %1 = vector.load %arg2[%c0_1, %c0_2] : memref<64x128xf32, #tpu.memory_space<vmem>>, vector<64x128xf32>
    %cst = arith.constant dense<0.000000e+00> : vector<8x128xf32>
    %2 = tpu.matmul %0, %1, %cst {dimension_numbers = #tpu.dot_dimension_numbers<[1], [0], [0], [1], [0, 0, 1, 1], [], []>} : vector<8x64xf32>, vector<64x128xf32>, vector<8x128xf32> -> vector<8x128xf32>
    %c0_3 = arith.constant 0 : index
    %c0_4 = arith.constant 0 : index
    %3 = vector.load %arg3[%c0_3, %c0_4] : memref<1x128xf32, #tpu.memory_space<vmem>>, vector<1x128xf32>
    %4 = vector.broadcast %3 : vector<1x128xf32> to vector<8x128xf32>
    %5 = arith.addf %2, %4 : vector<8x128xf32>
    %cst_5 = arith.constant 0.000000e+00 : f32
    %6 = vector.broadcast %cst_5 : f32 to vector<8x128xf32>
    %7 = arith.maximumf %5, %6 : vector<8x128xf32>
    %c0_6 = arith.constant 0 : index
    %c0_7 = arith.constant 0 : index
    %8 = vector.load %arg4[%c0_6, %c0_7] : memref<128x64xf32, #tpu.memory_space<vmem>>, vector<128x64xf32>
    %cst_8 = arith.constant dense<0.000000e+00> : vector<8x64xf32>
    %9 = tpu.matmul %7, %8, %cst_8 {dimension_numbers = #tpu.dot_dimension_numbers<[1], [0], [0], [1], [0, 0, 1, 1], [], []>} : vector<8x128xf32>, vector<128x64xf32>, vector<8x64xf32> -> vector<8x64xf32>
    %c0_9 = arith.constant 0 : index
    %c0_10 = arith.constant 0 : index
    %10 = vector.load %arg5[%c0_9, %c0_10] : memref<1x64xf32, #tpu.memory_space<vmem>>, vector<1x64xf32>
    %11 = vector.broadcast %10 : vector<1x64xf32> to vector<8x64xf32>
    %12 = arith.addf %9, %11 : vector<8x64xf32>
    %cst_11 = arith.constant 0.000000e+00 : f32
    %13 = vector.broadcast %cst_11 : f32 to vector<8x64xf32>
    %14 = arith.maximumf %12, %13 : vector<8x64xf32>
    %c0_12 = arith.constant 0 : index
    %c0_13 = arith.constant 0 : index
    %15 = vector.load %arg6[%c0_12, %c0_13] : memref<64x5xf32, #tpu.memory_space<vmem>>, vector<64x5xf32>
    %cst_14 = arith.constant dense<0.000000e+00> : vector<8x5xf32>
    %16 = tpu.matmul %14, %15, %cst_14 {dimension_numbers = #tpu.dot_dimension_numbers<[1], [0], [0], [1], [0, 0, 1, 1], [], []>} : vector<8x64xf32>, vector<64x5xf32>, vector<8x5xf32> -> vector<8x5xf32>
    %c0_15 = arith.constant 0 : index
    %c0_16 = arith.constant 0 : index
    %17 = vector.load %arg7[%c0_15, %c0_16] : memref<1x5xf32, #tpu.memory_space<vmem>>, vector<1x5xf32>
    %18 = vector.broadcast %17 : vector<1x5xf32> to vector<8x5xf32>
    %19 = arith.addf %16, %18 : vector<8x5xf32>
    %c0_17 = arith.constant 0 : index
    %c0_18 = arith.constant 0 : index
    %20 = vector.load %arg8[%c0_17, %c0_18] : memref<8x5xf32, #tpu.memory_space<vmem>>, vector<8x5xf32>
    tpu.vector_store %arg8[%c0_17, %c0_18], %19 {strides = array<i32>} : memref<8x5xf32, #tpu.memory_space<vmem>>, vector<8x5xf32>,
    return
  }
  func.func @transform_0(%arg0: i32) -> (i32, i32) {
    %c0_i32 = arith.constant 0 : i32
    %c0_i32_0 = arith.constant 0 : i32
    return %arg0, %c0_i32 : i32, i32
  }
  func.func @transform_1(%arg0: i32) -> (i32, i32) {
    %c0_i32 = arith.constant 0 : i32
    %c0_i32_0 = arith.constant 0 : i32
    %c0_i32_1 = arith.constant 0 : i32
    return %c0_i32, %c0_i32_0 : i32, i32
  }
  func.func @transform_2(%arg0: i32) -> (i32, i32) {
    %c0_i32 = arith.constant 0 : i32
    %c0_i32_0 = arith.constant 0 : i32
    %c0_i32_1 = arith.constant 0 : i32
    return %c0_i32, %c0_i32_0 : i32, i32
  }
  func.func @transform_3(%arg0: i32) -> (i32, i32) {
    %c0_i32 = arith.constant 0 : i32
    %c0_i32_0 = arith.constant 0 : i32
    %c0_i32_1 = arith.constant 0 : i32
    return %c0_i32, %c0_i32_0 : i32, i32
  }
  func.func @transform_4(%arg0: i32) -> (i32, i32) {
    %c0_i32 = arith.constant 0 : i32
    %c0_i32_0 = arith.constant 0 : i32
    %c0_i32_1 = arith.constant 0 : i32
    return %c0_i32, %c0_i32_0 : i32, i32
  }
  func.func @transform_5(%arg0: i32) -> (i32, i32) {
    %c0_i32 = arith.constant 0 : i32
    %c0_i32_0 = arith.constant 0 : i32
    %c0_i32_1 = arith.constant 0 : i32
    return %c0_i32, %c0_i32_0 : i32, i32
  }
  func.func @transform_6(%arg0: i32) -> (i32, i32) {
    %c0_i32 = arith.constant 0 : i32
    %c0_i32_0 = arith.constant 0 : i32
    %c0_i32_1 = arith.constant 0 : i32
    return %c0_i32, %c0_i32_0 : i32, i32
  }
  func.func @transform_7(%arg0: i32) -> (i32, i32) {
    %c0_i32 = arith.constant 0 : i32
    %c0_i32_0 = arith.constant 0 : i32
    return %arg0, %c0_i32 : i32, i32
  }
}

</mosaic_0001>

<bundles_post_ra>
// kernel: tpu_custom_call.1
= control target key start
LH: loop header
LB: loop body
LE: loop exit
PB: predicated region body
PF: predicated region fallthrough
CT: control target
= control target key end

     0   :  { %v454_v1 = vmov 0.0   ;;  %vm455_vm0 = vmmov 0   ;;  %s648_s0 = inlined_call_operand.vmem [shape: f32[8,64], index: 0, kind: input, shape index: {}]   ;;  %s649_s1 = inlined_call_operand.vmem [shape: f32[64,128], index: 1, kind: input, shape index: {}]   ;;  %s650_s2 = inlined_call_operand.vmem [shape: f32[1,128], index: 2, kind: input, shape index: {}]   ;;  %s651_s3 = inlined_call_operand.vmem [shape: f32[128,64], index: 3, kind: input, shape index: {}]   ;;  %s652_s4 = inlined_call_operand.vmem [shape: f32[1,64], index: 4, kind: input, shape index: {}]   ;;  %s653_s5 = inlined_call_operand.vmem [shape: f32[64,5], index: 5, kind: input, shape index: {}]   ;;  %s654_s6 = inlined_call_operand.vmem [shape: f32[1,5], index: 6, kind: input, shape index: {}]   ;;  %s655_s7 = inlined_call_operand.hbm [shape: f32[8,5], index: 7, kind: output, shape index: {}]  }
   0x1   :  { %v35_v0 = vld [vmem:[%s649_s1 + $0x38] sm:$0xff]  ;;  %356 = vmatprep.subr.mxu0 %v454_v1  ;;  %v34_v2 = vld [vmem:[%s649_s1 + $0x30] sm:$0xff]  ;;  %372 = vmatprep.mubr.msk.f32.mxu0 %vm455_vm0, %v454_v1  ;;  %v33_v3 = vld [vmem:[%s649_s1 + $0x28] sm:$0xff] }
   0x2   :  { %357 = vmatpush3.msra.mxu0 %v35_v0  ;;  %375 = vmatprep.subr.mxu1 %v454_v1  ;;  %v133_v4 = vld [vmem:[%s651_s3 + $0x78] sm:$0xff]  ;;  %v132_v5 = vld [vmem:[%s651_s3 + $0x70] sm:$0xff]  ;;  %v32_v6 = vld [vmem:[%s649_s1 + $0x20] sm:$0xff] }
   0x3   :  { %358 = vmatprep.subr.mxu0 %v454_v1  ;;  %407 = vmatprep.mubr.msk.f32.mxu1 %vm455_vm0, %v454_v1  ;;  %v131_v7 = vld [vmem:[%s651_s3 + $0x68] sm:$0xff]  ;;  %v31_v8 = vld [vmem:[%s649_s1 + $0x18] sm:$0xff]  ;;  %v130_v9 = vld [vmem:[%s651_s3 + $0x60] sm:$0xff] }
   0x4   :  { %359 = vmatpush3.msra.mxu0 %v34_v2  ;;  %376 = vmatpush3.msra.mxu1 %v133_v4 }
   0x5   :  { %360 = vmatprep.subr.mxu0 %v454_v1  ;;  %377 = vmatprep.subr.mxu1 %v454_v1 }
   0x6   :  { %361 = vmatpush3.msra.mxu0 %v33_v3  ;;  %378 = vmatpush3.msra.mxu1 %v132_v5 }
   0x7   :  { %362 = vmatprep.subr.mxu0 %v454_v1  ;;  %379 = vmatprep.subr.mxu1 %v454_v1 }
   0x8   :  { %12 = vsyncpa [#allocation3], 0  ;;  %363 = vmatpush3.msra.mxu0 %v32_v6  ;;  %380 = vmatpush3.msra.mxu1 %v131_v7  ;;  %v30_v10 = vld [vmem:[%s649_s1 + $0x10] sm:$0xff]  ;;  %v129_v11 = vld [vmem:[%s651_s3 + $0x58] sm:$0xff]  ;;  %vm43_vm1 = vcmask 523264   ;;  %s456_s21 = smov [#allocation2]  }
   0x9   :  { %364 = vmatprep.subr.mxu0 %v454_v1  ;;  %381 = vmatprep.subr.mxu1 %v454_v1  ;;  %v29_v12 = vld [vmem:[%s649_s1 + $0x8] sm:$0xff]  ;;  %v128_v13 = vld [vmem:[%s651_s3 + $0x50] sm:$0xff]  ;;  %v28_v14 = vld [vmem:[%s649_s1] sm:$0xff]  ;;  %s308_s22 = sshll.u32 %s456_s21, 4  ;;  %vm300_vm2 = vcmask 39936   ;;  %s309_s22 = int_to_ptr.vmem [resolvable:$true] %s308_s22 }
   0xa   :  { %365 = vmatpush3.msra.mxu0 %v31_v8  ;;  %382 = vmatpush3.msra.mxu1 %v130_v9  ;;  %v127_v15 = vld [vmem:[%s651_s3 + $0x48] sm:$0xff]  ;;  %v27_v16 = vld [vmem:[%s648_s0] sm:$0xff]  ;;  %v125_v18 = vld [vmem:[%s651_s3 + $0x38] sm:$0xff]  ;;  %p437_p1 = scmp.lt.s32.totalorder %s309_s22, %s309_s22 }
   0xb   :  { %366 = vmatprep.subr.mxu0 %v454_v1  ;;  %383 = vmatprep.subr.mxu1 %v454_v1  ;;  %v126_v17 = vld [vmem:[%s651_s3 + $0x40] sm:$0xff]  ;;  %v124_v19 = vld [vmem:[%s651_s3 + $0x30] sm:$0xff]  ;;  %v123_v20 = vld [vmem:[%s651_s3 + $0x28] sm:$0xff] }
   0xc   :  { %367 = vmatpush3.msra.mxu0 %v30_v10  ;;  %384 = vmatpush3.msra.mxu1 %v129_v11  ;;  %v122_v21 = vld [vmem:[%s651_s3 + $0x20] sm:$0xff]  ;;  %v121_v22 = vld [vmem:[%s651_s3 + $0x18] sm:$0xff]  ;;  %v120_v23 = vld [vmem:[%s651_s3 + $0x10] sm:$0xff] }
   0xd   :  { %368 = vmatprep.subr.mxu0 %v454_v1  ;;  %385 = vmatprep.subr.mxu1 %v454_v1  ;;  %v119_v24 = vld [vmem:[%s651_s3 + $0x8] sm:$0xff]  ;;  %v118_v25 = vld [vmem:[%s651_s3] sm:$0xff]  ;;  %v219_v26 = vld [vmem:[%s653_s5 + $0x38] sm:$0xff] }
   0xe   :  { %369 = vmatpush3.msra.mxu0 %v29_v12  ;;  %386 = vmatpush3.msra.mxu1 %v128_v13  ;;  %v218_v27 = vld [vmem:[%s653_s5 + $0x30] sm:$0xff]  ;;  %v217_v28 = vld [vmem:[%s653_s5 + $0x28] sm:$0xff]  ;;  %v216_v29 = vld [vmem:[%s653_s5 + $0x20] sm:$0xff] }
   0xf   :  { %370 = vmatprep.subr.mxu0 %v454_v1  ;;  %387 = vmatprep.subr.mxu1 %v454_v1  ;;  %v215_v30 = vld [vmem:[%s653_s5 + $0x18] sm:$0xff]  ;;  %v316_v31 = vld [vmem:[%s650_s2] ss:$0 sm:$0xff]  ;;  %v214_v36 = vld [vmem:[%s653_s5 + $0x10] sm:$0xff] }
  0x10   :  { %371 = vmatpush3.msra.mxu0 %v28_v14  ;;  %388 = vmatpush3.msra.mxu1 %v127_v15  ;;  %v213_v37 = vld [vmem:[%s653_s5 + $0x8] sm:$0xff]  ;;  %v212_v38 = vld [vmem:[%s653_s5] sm:$0xff]  ;;  %s432_s5 = scalar_lea.vmem %s309_s22, 128 }
  0x11   :  { %373 = vmatmul.mubr.msk.f32.vlgmr.msra.gmra.mxu0 %vm43_vm1, %v27_v16  ;;  %389 = vmatprep.subr.mxu1 %v454_v1  ;;  %v318_v39 = vld [vmem:[%s652_s4] ss:$0 sm:$0xff]  ;;  %p433_p0 = scmp.ne.s32.totalorder %s309_s22, %s432_s5  ;;  %p438_p2 = scmp.lt.s32.totalorder %s432_s5, %s432_s5 }
  0x12   :  { %390 = vmatpush3.msra.mxu1 %v126_v17  ;;  %410 = vmatprep.subr.mxu0 %v454_v1  ;;  %v319_v44 = vld [vmem:[%s654_s6] ss:$0 sm:$0xff] }
  0x13   :  { %391 = vmatprep.subr.mxu1 %v454_v1  ;;  %426 = vmatprep.mubr.msk.f32.mxu0 %vm455_vm0, %v454_v1  ;;  %p439_p3 = por %p438_p2, %p437_p1 }
  0x14   :  { %392 = vmatpush3.msra.mxu1 %v125_v18  ;;  %411 = vmatpush3.msra.mxu0 %v219_v26 }
  0x15   :  { %393 = vmatprep.subr.mxu1 %v454_v1  ;;  %412 = vmatprep.subr.mxu0 %v454_v1  ;;  %p440_p4 = pnand %p439_p3, %p433_p0 }
  0x16   :  { %394 = vmatpush3.msra.mxu1 %v124_v19  ;;  %413 = vmatpush3.msra.mxu0 %v218_v27 }
  0x17   :  { %395 = vmatprep.subr.mxu1 %v454_v1  ;;  %414 = vmatprep.subr.mxu0 %v454_v1 }
  0x18   :  { %396 = vmatpush3.msra.mxu1 %v123_v20  ;;  %415 = vmatpush3.msra.mxu0 %v217_v28 }
  0x19   :  { %397 = vmatprep.subr.mxu1 %v454_v1  ;;  %416 = vmatprep.subr.mxu0 %v454_v1 }
  0x1a   :  { %398 = vmatpush3.msra.mxu1 %v122_v21  ;;  %417 = vmatpush3.msra.mxu0 %v216_v29 }
  0x1b   :  { %399 = vmatprep.subr.mxu1 %v454_v1  ;;  %418 = vmatprep.subr.mxu0 %v454_v1 }
  0x1c   :  { %400 = vmatpush3.msra.mxu1 %v121_v22  ;;  %419 = vmatpush3.msra.mxu0 %v215_v30 }
  0x1d   :  { %401 = vmatprep.subr.mxu1 %v454_v1  ;;  %420 = vmatprep.subr.mxu0 %v454_v1 }
  0x1e   :  { %402 = vmatpush3.msra.mxu1 %v120_v23  ;;  %421 = vmatpush3.msra.mxu0 %v214_v36 }
  0x1f   :  { %403 = vmatprep.subr.mxu1 %v454_v1  ;;  %422 = vmatprep.subr.mxu0 %v454_v1 }
  0x20   :  { %404 = vmatpush3.msra.mxu1 %v119_v24  ;;  %423 = vmatpush3.msra.mxu0 %v213_v37 }
  0x21   :  { %405 = vmatprep.subr.mxu1 %v454_v1  ;;  %424 = vmatprep.subr.mxu0 %v454_v1 }
  0x22   :  { %406 = vmatpush3.msra.mxu1 %v118_v25  ;;  %425 = vmatpush3.msra.mxu0 %v212_v38 }
  0xd1   :  { %v113_v32 = vpop.f32.mrf.mxu0 }
  0xd2   :  { %v114_v33 = vadd.f32 %v316_v31, %v113_v32 }
  0xd3   :  { %v374_v34 = vpop.f32.mrf.mxu0 }
  0xd4   :  { %v117_v35 = vmax.f32 %v114_v33, 0.0 }
  0xd6   :  { %408 = vmatmul.mubr.f32.vlgmr.msra.gmra.mxu1 %v117_v35 }
 0x196   :  { %v207_v40 = vpop.f32.mrf.mxu1 }
 0x197   :  { %v208_v41 = vadd.f32 %v318_v39, %v207_v40 }
 0x198   :  { %v409_v42 = vpop.f32.mrf.mxu1 }
 0x199   :  { %v211_v43 = vmax.f32 %v208_v41, 0.0 }
 0x19b   :  { %427 = vmatmul.mubr.msk.f32.vlgmr.msra.gmra.mxu0 %vm43_vm1, %v211_v43 }
 0x25b   :  { %v296_v45 = vpop.f32.mrf.mxu0 }
 0x25c   :  { %v297_v46 = vadd.f32 %v319_v44, %v296_v45 }
 0x25d   :  { %v428_v47 = vpop.f32.mrf.mxu0 }
 0x25e   :  { %301 = vst.msk [vmem:[#allocation2] sm:$0xff] %vm300_vm2, %v297_v46 }
 0x25f   :  { %443 = shalt.err (!%p440_p4)
}
 0x260   :  { %311 = dma.vmem_to_hbm [thread:$0]  %s309_s22, 128, %s655_s7, [#allocation3]  }
 0x261   :  { %452 = dma.done.wait [#allocation3], 128  }
 0x262   :  { %453 = vsyncadd [#allocation3], 4294967168 }
 0x263   :  { %315 = vsyncpa [#allocation3], 1 }

</bundles_post_ra>
